<compile_context>
chip_gen: v7x
topology: tpu7x:2x2x1
jax: 0.10.0
libtpu: 0.0.40
codegen_flags: <defaults>
</compile_context>

<pallas_src>
import math
from functools import partial

import jax
import jax.numpy as jnp
from jax import lax
from jax.experimental import pallas as pl
from jax.experimental.pallas import tpu as pltpu


def mha_kernel(x_q_ref, x_kv_ref, wq_ref, bq_ref, wkv_ref, bkv_ref,
               wo_ref, bo_ref, o_ref, q_scr, k_scr, v_scr, ctx_scr, *,
               num_heads, d_k):
    """One (batch, query-tile) pair per grid step.

    x_q_ref  : (1, Tq, D)  query-tile rows of x       (f32)
    x_kv_ref : (1, S,  D)  full-sequence x for K/V    (f32)
    wq_ref   : (D, D)      Wq                         (bf16, (in, out) layout)
    bq_ref   : (1, D)      bq                         (f32)
    wkv_ref  : (D, 2D)     packed [Wk | Wv]           (bf16)
    bkv_ref  : (1, 2D)     packed [bk | bv]           (f32)
    wo_ref   : (D, D)      output projection weight   (bf16)
    bo_ref   : (1, D)      bo                         (f32)
    o_ref    : (1, Tq, D)  output tile
    q_scr    : (Tq, D) bf16 VMEM  scaled queries
    k_scr    : (S,  D) bf16 VMEM  keys
    v_scr    : (S,  D) bf16 VMEM  values
    ctx_scr  : (Tq, D) bf16 VMEM  per-head contexts concatenated on lanes
    """
    D = num_heads * d_k
    scale = 1.0 / math.sqrt(d_k)

    xq = x_q_ref[0].astype(jnp.bfloat16)      # (Tq, D) bf16 MXU operand
    xkv = x_kv_ref[0].astype(jnp.bfloat16)    # (S,  D)

    # Q projection; fold the 1/sqrt(d_k) scale into Q once (f32, pre-cast) so
    # the per-head (Tq, S) score scaling multiply disappears.
    q = (jnp.dot(xq, wq_ref[...], preferred_element_type=jnp.float32)
         + bq_ref[...]) * scale
    q_scr[...] = q.astype(jnp.bfloat16)

    # Fused K/V projection: one MXU pass with N = 2D, f32 accumulate.
    # TODO(synk): recomputed per q-tile; for long S split the K/V projection
    # into its own pallas_call (or a kv-tiled flash loop) instead.
    kv = (jnp.dot(xkv, wkv_ref[...], preferred_element_type=jnp.float32)
          + bkv_ref[...])
    k_scr[...] = kv[:, :D].astype(jnp.bfloat16)
    v_scr[...] = kv[:, D:].astype(jnp.bfloat16)

    # torch's view(B,S,H,d_k).transpose(1,2) == contiguous per-head last-dim
    # slices, so each head is a static lane slice of the staged buffers.
    # Per-head temporaries are consumed within the iteration (ctx goes back to
    # VMEM), so live ranges stay bounded despite the static unroll.
    # TODO(synk): for large H with d_k < 128, pack 128/d_k heads per MXU pass
    # (block-diagonal) and switch to a fori_loop over packed head groups.
    for h in range(num_heads):
        sl = slice(h * d_k, (h + 1) * d_k)
        qh = q_scr[:, sl]                          # (Tq, d_k) bf16, pre-scaled
        kh = k_scr[:, sl]                          # (S,  d_k) bf16
        vh = v_scr[:, sl]                          # (S,  d_k) bf16

        # Scores: contract over last dim of both operands -> no K transpose.
        s = lax.dot_general(qh, kh,
                            dimension_numbers=(((1,), (1,)), ((), ())),
                            preferred_element_type=jnp.float32)       # (Tq, S)

        # Max-stabilized softmax in f32; divide -> EUP reciprocal (approx is
        # within the bf16-class tolerance; use exact if tighter parity needed).
        s = s - jnp.max(s, axis=-1, keepdims=True)
        p = jnp.exp(s)
        p = p * pl.reciprocal(jnp.sum(p, axis=-1, keepdims=True), approx=True)

        ctx_scr[:, sl] = jnp.dot(p.astype(jnp.bfloat16), vh,
                                 preferred_element_type=jnp.float32
                                 ).astype(jnp.bfloat16)                # (Tq, d_k)

    # Single full-contraction-depth (K = D) output projection after the loop.
    out = jnp.dot(ctx_scr[...], wo_ref[...],
                  preferred_element_type=jnp.float32) + bo_ref[...]
    # TODO(synk): nn.Dropout is identity in eval mode; training-mode stochastic
    # dropout (pltpu.prng_seed / prng_random_bits) is intentionally not applied.
    o_ref[0] = out.astype(o_ref.dtype)


def _pick_q_tile(S):
    # 256-aligned q tiles feed the v6e/v7x (256-wide) MXU; 128 suits v5e;
    # short sequences use the full extent (toy test: S itself).
    for t in (512, 256, 128):
        if S % t == 0:
            return t
    return S


def multi_head_attention(x, params, num_heads):
    B, S, D = x.shape
    d_k = D // num_heads
    wq, bq, wk, bk, wv, bv, wo, bo = params

    # Host-side packing: fused K/V weight/bias; weights downcast to bf16 so the
    # MXU runs at bf16 rate and the resident weight VMEM footprint is halved.
    # TODO(synk): on v7x the projection weights could be fp8-quantized instead.
    wq_bf = wq.astype(jnp.bfloat16)                                   # (D, D)
    wkv = jnp.concatenate([wk, wv], axis=1).astype(jnp.bfloat16)      # (D, 2D)
    bkv = jnp.concatenate([bk, bv], axis=1)                           # (1, 2D)
    wo_bf = wo.astype(jnp.bfloat16)                                   # (D, D)

    tq = _pick_q_tile(S)
    n_qt = S // tq

    kernel = partial(mha_kernel, num_heads=num_heads, d_k=d_k)

    # Grid-invariant inputs: single-buffered (constant index_map needs no
    # double buffer; halves weight residency in VMEM).
    def const_spec(shape):
        return pl.BlockSpec(shape, lambda b, qt: (0,) * len(shape),
                            pipeline_mode=pl.Buffered(buffer_count=1))

    # Explicit scoped-VMEM limit sized from the actual block footprint
    # (double-buffered activations, single-buffered weights, scratch, live
    # f32 intermediates) with 2x headroom; clamped to be safe on all gens.
    f32, bf16 = 4, 2
    block_bytes = (
        2 * tq * D * f32                         # x q-tile (double-buffered)
        + 2 * S * D * f32                        # x kv slab (double-buffered)
        + 2 * tq * D * f32                       # output tile (double-buffered)
        + (D * D + D * 2 * D + D * D) * bf16     # single-buffered bf16 weights
        + 4 * D * f32                            # biases
        + (2 * tq * D + 2 * S * D) * bf16        # q/k/v/ctx scratch
    )
    live_bytes = (S * 2 * D + 2 * tq * S + 2 * tq * D) * f32
    vmem_limit = int(min(64 * 1024 * 1024,
                         max(32 * 1024 * 1024,
                             2 * (block_bytes + live_bytes))))

    # Advisory roofline for XLA's scheduler.
    flops = B * (2 * S * D * D                   # Q projection
                 + n_qt * 4 * S * D * D          # K/V projection (per q-tile)
                 + 4 * S * S * D                 # scores + ctx over all heads
                 + 2 * S * D * D)                # output projection
    transcendentals = B * num_heads * S * S
    bytes_accessed = (B * S * D * f32 * (1 + n_qt)          # x (q + kv specs)
                      + B * S * D * f32                     # output
                      + (wq_bf.size + wkv.size + wo_bf.size) * bf16
                      + (bq.size + bkv.size + bo.size) * f32)

    # TODO(synk): with D < 128 (toy test D=32) the output tile is lane-sparse;
    # for production shapes fold batch/heads into the lane axis wrapper-side.
    return pl.pallas_call(
        kernel,
        out_shape=jax.ShapeDtypeStruct((B, S, D), x.dtype),
        grid=(B, n_qt),
        in_specs=[
            pl.BlockSpec((1, tq, D), lambda b, qt: (b, qt, 0)),   # x rows for Q
            pl.BlockSpec((1, S, D), lambda b, qt: (b, 0, 0)),     # x slab for K/V
            const_spec((D, D)),          # Wq
            const_spec((1, D)),          # bq
            const_spec((D, 2 * D)),      # packed Wkv
            const_spec((1, 2 * D)),      # packed bkv
            const_spec((D, D)),          # Wo
            const_spec((1, D)),          # bo
        ],
        out_specs=pl.BlockSpec((1, tq, D), lambda b, qt: (b, qt, 0)),
        scratch_shapes=[
            pltpu.VMEM((tq, D), jnp.bfloat16),   # q (pre-scaled)
            pltpu.VMEM((S, D), jnp.bfloat16),    # k
            pltpu.VMEM((S, D), jnp.bfloat16),    # v
            pltpu.VMEM((tq, D), jnp.bfloat16),   # ctx (lane-concat of heads)
        ],
        compiler_params=pltpu.CompilerParams(
            dimension_semantics=("parallel", "parallel"),
            vmem_limit_bytes=vmem_limit),
        cost_estimate=pl.CostEstimate(flops=flops,
                                      transcendentals=transcendentals,
                                      bytes_accessed=bytes_accessed),
    )(x, x, wq_bf, bq, wkv, bkv, wo_bf, bo)


def init_params(key, d_model):
    """Deterministic synthetic parameters. Weights stored as (in, out) so the
    kernel computes y = x @ W + b (equivalent to torch's x @ W_t.T + b)."""
    keys = jax.random.split(key, 8)
    scale = 1.0 / math.sqrt(d_model)

    def lin(kw, kb):
        w = jax.random.uniform(kw, (d_model, d_model), jnp.float32, -scale, scale)
        b = jax.random.uniform(kb, (1, d_model), jnp.float32, -scale, scale)
        return w, b

    wq, bq = lin(keys[0], keys[1])
    wk, bk = lin(keys[2], keys[3])
    wv, bv = lin(keys[4], keys[5])
    wo, bo = lin(keys[6], keys[7])
    return (wq, bq, wk, bk, wv, bv, wo, bo)


def reference_mha(x, params, num_heads):
    """Pure-JAX f32 reference mirroring the PyTorch forward (dropout = eval)."""
    B, S, D = x.shape
    d_k = D // num_heads
    wq, bq, wk, bk, wv, bv, wo, bo = params
    q = (x @ wq + bq).reshape(B, S, num_heads, d_k).transpose(0, 2, 1, 3)
    k = (x @ wk + bk).reshape(B, S, num_heads, d_k).transpose(0, 2, 1, 3)
    v = (x @ wv + bv).reshape(B, S, num_heads, d_k).transpose(0, 2, 1, 3)
    s = jnp.einsum("bhqd,bhkd->bhqk", q, k) / math.sqrt(d_k)
    p = jax.nn.softmax(s, axis=-1)
    ctx = jnp.einsum("bhqk,bhkd->bhqd", p, v)
    ctx = ctx.transpose(0, 2, 1, 3).reshape(B, S, D)
    return ctx @ wo + bo


if __name__ == "__main__":
    B, S, D, H = 2, 8, 32, 4

    key = jax.random.PRNGKey(0)
    kx, kp = jax.random.split(key)
    x = jax.random.normal(kx, (B, S, D), jnp.float32)
    params = init_params(kp, D)

    out = multi_head_attention(x, params, H)
    out = jax.block_until_ready(out)

    ref = reference_mha(x, params, H)
    assert out.shape == (B, S, D)
    # bf16 MXU operands (+ approx reciprocal) vs. the f32 reference -> loose tol.
    assert jnp.allclose(out, ref, atol=2e-2, rtol=2e-2), float(
        jnp.max(jnp.abs(out - ref)))

    print("KERNEL_OK")
</pallas_src>

<mosaic_0001>
module attributes {stable_mosaic.version = 11 : i64} {
  func.func @mha_kernel(%arg0: i32, %arg1: i32, %arg2: memref<1x8x32xf32, #tpu.memory_space<vmem>>, %arg3: memref<1x8x32xf32, #tpu.memory_space<vmem>>, %arg4: memref<32x32xbf16, #tpu.memory_space<vmem>>, %arg5: memref<1x32xf32, #tpu.memory_space<vmem>>, %arg6: memref<32x64xbf16, #tpu.memory_space<vmem>>, %arg7: memref<1x64xf32, #tpu.memory_space<vmem>>, %arg8: memref<32x32xbf16, #tpu.memory_space<vmem>>, %arg9: memref<1x32xf32, #tpu.memory_space<vmem>>, %arg10: memref<1x8x32xf32, #tpu.memory_space<vmem>>, %arg11: memref<8x32xbf16, #tpu.memory_space<vmem>>, %arg12: memref<8x32xbf16, #tpu.memory_space<vmem>>, %arg13: memref<8x32xbf16, #tpu.memory_space<vmem>>, %arg14: memref<8x32xbf16, #tpu.memory_space<vmem>>) attributes {dimension_semantics = [#tpu.dimension_semantics<parallel>, #tpu.dimension_semantics<parallel>], iteration_bounds = array<i64: 2, 1>, scalar_prefetch = 0 : i64, scratch_operands = 4 : i64, tpu.core_type = #tpu.core_type<tc>, window_params = [{transform_indices = @transform_0, window_bounds = array<i64: 1, 8, 32>}, {transform_indices = @transform_1, window_bounds = array<i64: 1, 8, 32>}, {pipeline_mode = #tpu.pipeline_mode<synchronous>, transform_indices = @transform_2, window_bounds = array<i64: 32, 32>}, {pipeline_mode = #tpu.pipeline_mode<synchronous>, transform_indices = @transform_3, window_bounds = array<i64: 1, 32>}, {pipeline_mode = #tpu.pipeline_mode<synchronous>, transform_indices = @transform_4, window_bounds = array<i64: 32, 64>}, {pipeline_mode = #tpu.pipeline_mode<synchronous>, transform_indices = @transform_5, window_bounds = array<i64: 1, 64>}, {pipeline_mode = #tpu.pipeline_mode<synchronous>, transform_indices = @transform_6, window_bounds = array<i64: 32, 32>}, {pipeline_mode = #tpu.pipeline_mode<synchronous>, transform_indices = @transform_7, window_bounds = array<i64: 1, 32>}, {transform_indices = @transform_8, window_bounds = array<i64: 1, 8, 32>}]} {
    %c0 = arith.constant 0 : index
    %c0_0 = arith.constant 0 : index
    %c0_1 = arith.constant 0 : index
    %0 = vector.load %arg2[%c0, %c0_0, %c0_1] : memref<1x8x32xf32, #tpu.memory_space<vmem>>, vector<1x8x32xf32>
    %1 = vector.shape_cast %0 : vector<1x8x32xf32> to vector<8x32xf32>
    %2 = arith.truncf %1 : vector<8x32xf32> to vector<8x32xbf16>
    %c0_2 = arith.constant 0 : index
    %c0_3 = arith.constant 0 : index
    %c0_4 = arith.constant 0 : index
    %3 = vector.load %arg3[%c0_2, %c0_3, %c0_4] : memref<1x8x32xf32, #tpu.memory_space<vmem>>, vector<1x8x32xf32>
    %4 = vector.shape_cast %3 : vector<1x8x32xf32> to vector<8x32xf32>
    %5 = arith.truncf %4 : vector<8x32xf32> to vector<8x32xbf16>
    %c0_5 = arith.constant 0 : index
    %c0_6 = arith.constant 0 : index
    %6 = vector.load %arg4[%c0_5, %c0_6] : memref<32x32xbf16, #tpu.memory_space<vmem>>, vector<32x32xbf16>
    %cst = arith.constant dense<0.000000e+00> : vector<8x32xf32>
    %7 = tpu.matmul %2, %6, %cst {dimension_numbers = #tpu.dot_dimension_numbers<[1], [0], [0], [1], [0, 0, 1, 1], [], []>} : vector<8x32xbf16>, vector<32x32xbf16>, vector<8x32xf32> -> vector<8x32xf32>
    %c0_7 = arith.constant 0 : index
    %c0_8 = arith.constant 0 : index
    %8 = vector.load %arg5[%c0_7, %c0_8] : memref<1x32xf32, #tpu.memory_space<vmem>>, vector<1x32xf32>
    %9 = vector.broadcast %8 : vector<1x32xf32> to vector<8x32xf32>
    %10 = arith.addf %7, %9 : vector<8x32xf32>
    %cst_9 = arith.constant 0.353553385 : f32
    %11 = vector.broadcast %cst_9 : f32 to vector<8x32xf32>
    %12 = arith.mulf %10, %11 : vector<8x32xf32>
    %13 = arith.truncf %12 : vector<8x32xf32> to vector<8x32xbf16>
    %c0_10 = arith.constant 0 : index
    %c0_11 = arith.constant 0 : index
    %14 = vector.load %arg11[%c0_10, %c0_11] : memref<8x32xbf16, #tpu.memory_space<vmem>>, vector<8x32xbf16>
    tpu.vector_store %arg11[%c0_10, %c0_11], %13 {strides = array<i32>} : memref<8x32xbf16, #tpu.memory_space<vmem>>, vector<8x32xbf16>,
    %c0_12 = arith.constant 0 : index
    %c0_13 = arith.constant 0 : index
    %15 = vector.load %arg6[%c0_12, %c0_13] : memref<32x64xbf16, #tpu.memory_space<vmem>>, vector<32x64xbf16>
    %cst_14 = arith.constant dense<0.000000e+00> : vector<8x64xf32>
    %16 = tpu.matmul %5, %15, %cst_14 {dimension_numbers = #tpu.dot_dimension_numbers<[1], [0], [0], [1], [0, 0, 1, 1], [], []>} : vector<8x32xbf16>, vector<32x64xbf16>, vector<8x64xf32> -> vector<8x64xf32>
    %c0_15 = arith.constant 0 : index
    %c0_16 = arith.constant 0 : index
    %17 = vector.load %arg7[%c0_15, %c0_16] : memref<1x64xf32, #tpu.memory_space<vmem>>, vector<1x64xf32>
    %18 = vector.broadcast %17 : vector<1x64xf32> to vector<8x64xf32>
    %19 = arith.addf %16, %18 : vector<8x64xf32>
    %20 = vector.extract_strided_slice %19 {offsets = [0, 0], sizes = [8, 32], strides = [1, 1]} : vector<8x64xf32> to vector<8x32xf32>
    %21 = arith.truncf %20 : vector<8x32xf32> to vector<8x32xbf16>
    %c0_17 = arith.constant 0 : index
    %c0_18 = arith.constant 0 : index
    %22 = vector.load %arg12[%c0_17, %c0_18] : memref<8x32xbf16, #tpu.memory_space<vmem>>, vector<8x32xbf16>
    tpu.vector_store %arg12[%c0_17, %c0_18], %21 {strides = array<i32>} : memref<8x32xbf16, #tpu.memory_space<vmem>>, vector<8x32xbf16>,
    %23 = vector.extract_strided_slice %19 {offsets = [0, 32], sizes = [8, 32], strides = [1, 1]} : vector<8x64xf32> to vector<8x32xf32>
    %24 = arith.truncf %23 : vector<8x32xf32> to vector<8x32xbf16>
    %c0_19 = arith.constant 0 : index
    %c0_20 = arith.constant 0 : index
    %25 = vector.load %arg13[%c0_19, %c0_20] : memref<8x32xbf16, #tpu.memory_space<vmem>>, vector<8x32xbf16>
    tpu.vector_store %arg13[%c0_19, %c0_20], %24 {strides = array<i32>} : memref<8x32xbf16, #tpu.memory_space<vmem>>, vector<8x32xbf16>,
    %c0_21 = arith.constant 0 : index
    %c0_22 = arith.constant 0 : index
    %26 = vector.load %arg11[%c0_21, %c0_22] : memref<8x32xbf16, #tpu.memory_space<vmem>>, vector<8x8xbf16>
    %c0_23 = arith.constant 0 : index
    %c0_24 = arith.constant 0 : index
    %27 = vector.load %arg12[%c0_23, %c0_24] : memref<8x32xbf16, #tpu.memory_space<vmem>>, vector<8x8xbf16>
    %c0_25 = arith.constant 0 : index
    %c0_26 = arith.constant 0 : index
    %28 = vector.load %arg13[%c0_25, %c0_26] : memref<8x32xbf16, #tpu.memory_space<vmem>>, vector<8x8xbf16>
    %cst_27 = arith.constant dense<0.000000e+00> : vector<8x8xf32>
    %29 = tpu.matmul %26, %27, %cst_27 {dimension_numbers = #tpu.dot_dimension_numbers<[1], [1], [0], [0], [0, 0, 1, 0], [], []>} : vector<8x8xbf16>, vector<8x8xbf16>, vector<8x8xf32> -> vector<8x8xf32>
    %cst_28 = arith.constant dense<0xFF800000> : vector<8xf32>
    %30 = vector.multi_reduction <maximumf>, %29, %cst_28 [1] : vector<8x8xf32> to vector<8xf32>
    %31 = vector.shape_cast %30 : vector<8xf32> to vector<8x1xf32>
    %32 = vector.broadcast %31 : vector<8x1xf32> to vector<8x8xf32>
    %33 = arith.subf %29, %32 : vector<8x8xf32>
    %34 = math.exp %33 : vector<8x8xf32>
    %cst_29 = arith.constant dense<0.000000e+00> : vector<8xf32>
    %35 = vector.multi_reduction <add>, %34, %cst_29 [1] : vector<8x8xf32> to vector<8xf32>
    %36 = vector.shape_cast %35 : vector<8xf32> to vector<8x1xf32>
    %37 = tpu.reciprocal %36 {approx = true} : vector<8x1xf32> -> vector<8x1xf32>
    %38 = vector.broadcast %37 : vector<8x1xf32> to vector<8x8xf32>
    %39 = arith.mulf %34, %38 : vector<8x8xf32>
    %40 = arith.truncf %39 : vector<8x8xf32> to vector<8x8xbf16>
    %cst_30 = arith.constant dense<0.000000e+00> : vector<8x8xf32>
    %41 = tpu.matmul %40, %28, %cst_30 {dimension_numbers = #tpu.dot_dimension_numbers<[1], [0], [0], [1], [0, 0, 1, 1], [], []>} : vector<8x8xbf16>, vector<8x8xbf16>, vector<8x8xf32> -> vector<8x8xf32>
    %42 = arith.truncf %41 : vector<8x8xf32> to vector<8x8xbf16>
    %c0_31 = arith.constant 0 : index
    %c0_32 = arith.constant 0 : index
    %43 = vector.load %arg14[%c0_31, %c0_32] : memref<8x32xbf16, #tpu.memory_space<vmem>>, vector<8x8xbf16>
    tpu.vector_store %arg14[%c0_31, %c0_32], %42 {strides = array<i32>} : memref<8x32xbf16, #tpu.memory_space<vmem>>, vector<8x8xbf16>,
    %c0_33 = arith.constant 0 : index
    %c8 = arith.constant 8 : index
    %44 = vector.load %arg11[%c0_33, %c8] : memref<8x32xbf16, #tpu.memory_space<vmem>>, vector<8x8xbf16>
    %c0_34 = arith.constant 0 : index
    %c8_35 = arith.constant 8 : index
    %45 = vector.load %arg12[%c0_34, %c8_35] : memref<8x32xbf16, #tpu.memory_space<vmem>>, vector<8x8xbf16>
    %c0_36 = arith.constant 0 : index
    %c8_37 = arith.constant 8 : index
    %46 = vector.load %arg13[%c0_36, %c8_37] : memref<8x32xbf16, #tpu.memory_space<vmem>>, vector<8x8xbf16>
    %cst_38 = arith.constant dense<0.000000e+00> : vector<8x8xf32>
    %47 = tpu.matmul %44, %45, %cst_38 {dimension_numbers = #tpu.dot_dimension_numbers<[1], [1], [0], [0], [0, 0, 1, 0], [], []>} : vector<8x8xbf16>, vector<8x8xbf16>, vector<8x8xf32> -> vector<8x8xf32>
    %cst_39 = arith.constant dense<0xFF800000> : vector<8xf32>
    %48 = vector.multi_reduction <maximumf>, %47, %cst_39 [1] : vector<8x8xf32> to vector<8xf32>
    %49 = vector.shape_cast %48 : vector<8xf32> to vector<8x1xf32>
    %50 = vector.broadcast %49 : vector<8x1xf32> to vector<8x8xf32>
    %51 = arith.subf %47, %50 : vector<8x8xf32>
    %52 = math.exp %51 : vector<8x8xf32>
    %cst_40 = arith.constant dense<0.000000e+00> : vector<8xf32>
    %53 = vector.multi_reduction <add>, %52, %cst_40 [1] : vector<8x8xf32> to vector<8xf32>
    %54 = vector.shape_cast %53 : vector<8xf32> to vector<8x1xf32>
    %55 = tpu.reciprocal %54 {approx = true} : vector<8x1xf32> -> vector<8x1xf32>
    %56 = vector.broadcast %55 : vector<8x1xf32> to vector<8x8xf32>
    %57 = arith.mulf %52, %56 : vector<8x8xf32>
    %58 = arith.truncf %57 : vector<8x8xf32> to vector<8x8xbf16>
    %cst_41 = arith.constant dense<0.000000e+00> : vector<8x8xf32>
    %59 = tpu.matmul %58, %46, %cst_41 {dimension_numbers = #tpu.dot_dimension_numbers<[1], [0], [0], [1], [0, 0, 1, 1], [], []>} : vector<8x8xbf16>, vector<8x8xbf16>, vector<8x8xf32> -> vector<8x8xf32>
    %60 = arith.truncf %59 : vector<8x8xf32> to vector<8x8xbf16>
    %c0_42 = arith.constant 0 : index
    %c8_43 = arith.constant 8 : index
    %61 = vector.load %arg14[%c0_42, %c8_43] : memref<8x32xbf16, #tpu.memory_space<vmem>>, vector<8x8xbf16>
    tpu.vector_store %arg14[%c0_42, %c8_43], %60 {strides = array<i32>} : memref<8x32xbf16, #tpu.memory_space<vmem>>, vector<8x8xbf16>,
    %c0_44 = arith.constant 0 : index
    %c16 = arith.constant 16 : index
    %62 = vector.load %arg11[%c0_44, %c16] : memref<8x32xbf16, #tpu.memory_space<vmem>>, vector<8x8xbf16>
    %c0_45 = arith.constant 0 : index
    %c16_46 = arith.constant 16 : index
    %63 = vector.load %arg12[%c0_45, %c16_46] : memref<8x32xbf16, #tpu.memory_space<vmem>>, vector<8x8xbf16>
    %c0_47 = arith.constant 0 : index
    %c16_48 = arith.constant 16 : index
    %64 = vector.load %arg13[%c0_47, %c16_48] : memref<8x32xbf16, #tpu.memory_space<vmem>>, vector<8x8xbf16>
    %cst_49 = arith.constant dense<0.000000e+00> : vector<8x8xf32>
    %65 = tpu.matmul %62, %63, %cst_49 {dimension_numbers = #tpu.dot_dimension_numbers<[1], [1], [0], [0], [0, 0, 1, 0], [], []>} : vector<8x8xbf16>, vector<8x8xbf16>, vector<8x8xf32> -> vector<8x8xf32>
    %cst_50 = arith.constant dense<0xFF800000> : vector<8xf32>
    %66 = vector.multi_reduction <maximumf>, %65, %cst_50 [1] : vector<8x8xf32> to vector<8xf32>
    %67 = vector.shape_cast %66 : vector<8xf32> to vector<8x1xf32>
    %68 = vector.broadcast %67 : vector<8x1xf32> to vector<8x8xf32>
    %69 = arith.subf %65, %68 : vector<8x8xf32>
    %70 = math.exp %69 : vector<8x8xf32>
    %cst_51 = arith.constant dense<0.000000e+00> : vector<8xf32>
    %71 = vector.multi_reduction <add>, %70, %cst_51 [1] : vector<8x8xf32> to vector<8xf32>
    %72 = vector.shape_cast %71 : vector<8xf32> to vector<8x1xf32>
    %73 = tpu.reciprocal %72 {approx = true} : vector<8x1xf32> -> vector<8x1xf32>
    %74 = vector.broadcast %73 : vector<8x1xf32> to vector<8x8xf32>
    %75 = arith.mulf %70, %74 : vector<8x8xf32>
    %76 = arith.truncf %75 : vector<8x8xf32> to vector<8x8xbf16>
    %cst_52 = arith.constant dense<0.000000e+00> : vector<8x8xf32>
    %77 = tpu.matmul %76, %64, %cst_52 {dimension_numbers = #tpu.dot_dimension_numbers<[1], [0], [0], [1], [0, 0, 1, 1], [], []>} : vector<8x8xbf16>, vector<8x8xbf16>, vector<8x8xf32> -> vector<8x8xf32>
    %78 = arith.truncf %77 : vector<8x8xf32> to vector<8x8xbf16>
    %c0_53 = arith.constant 0 : index
    %c16_54 = arith.constant 16 : index
    %79 = vector.load %arg14[%c0_53, %c16_54] : memref<8x32xbf16, #tpu.memory_space<vmem>>, vector<8x8xbf16>
    tpu.vector_store %arg14[%c0_53, %c16_54], %78 {strides = array<i32>} : memref<8x32xbf16, #tpu.memory_space<vmem>>, vector<8x8xbf16>,
    %c0_55 = arith.constant 0 : index
    %c24 = arith.constant 24 : index
    %80 = vector.load %arg11[%c0_55, %c24] : memref<8x32xbf16, #tpu.memory_space<vmem>>, vector<8x8xbf16>
    %c0_56 = arith.constant 0 : index
    %c24_57 = arith.constant 24 : index
    %81 = vector.load %arg12[%c0_56, %c24_57] : memref<8x32xbf16, #tpu.memory_space<vmem>>, vector<8x8xbf16>
    %c0_58 = arith.constant 0 : index
    %c24_59 = arith.constant 24 : index
    %82 = vector.load %arg13[%c0_58, %c24_59] : memref<8x32xbf16, #tpu.memory_space<vmem>>, vector<8x8xbf16>
    %cst_60 = arith.constant dense<0.000000e+00> : vector<8x8xf32>
    %83 = tpu.matmul %80, %81, %cst_60 {dimension_numbers = #tpu.dot_dimension_numbers<[1], [1], [0], [0], [0, 0, 1, 0], [], []>} : vector<8x8xbf16>, vector<8x8xbf16>, vector<8x8xf32> -> vector<8x8xf32>
    %cst_61 = arith.constant dense<0xFF800000> : vector<8xf32>
    %84 = vector.multi_reduction <maximumf>, %83, %cst_61 [1] : vector<8x8xf32> to vector<8xf32>
    %85 = vector.shape_cast %84 : vector<8xf32> to vector<8x1xf32>
    %86 = vector.broadcast %85 : vector<8x1xf32> to vector<8x8xf32>
    %87 = arith.subf %83, %86 : vector<8x8xf32>
    %88 = math.exp %87 : vector<8x8xf32>
    %cst_62 = arith.constant dense<0.000000e+00> : vector<8xf32>
    %89 = vector.multi_reduction <add>, %88, %cst_62 [1] : vector<8x8xf32> to vector<8xf32>
    %90 = vector.shape_cast %89 : vector<8xf32> to vector<8x1xf32>
    %91 = tpu.reciprocal %90 {approx = true} : vector<8x1xf32> -> vector<8x1xf32>
    %92 = vector.broadcast %91 : vector<8x1xf32> to vector<8x8xf32>
    %93 = arith.mulf %88, %92 : vector<8x8xf32>
    %94 = arith.truncf %93 : vector<8x8xf32> to vector<8x8xbf16>
    %cst_63 = arith.constant dense<0.000000e+00> : vector<8x8xf32>
    %95 = tpu.matmul %94, %82, %cst_63 {dimension_numbers = #tpu.dot_dimension_numbers<[1], [0], [0], [1], [0, 0, 1, 1], [], []>} : vector<8x8xbf16>, vector<8x8xbf16>, vector<8x8xf32> -> vector<8x8xf32>
    %96 = arith.truncf %95 : vector<8x8xf32> to vector<8x8xbf16>
    %c0_64 = arith.constant 0 : index
    %c24_65 = arith.constant 24 : index
    %97 = vector.load %arg14[%c0_64, %c24_65] : memref<8x32xbf16, #tpu.memory_space<vmem>>, vector<8x8xbf16>
    tpu.vector_store %arg14[%c0_64, %c24_65], %96 {strides = array<i32>} : memref<8x32xbf16, #tpu.memory_space<vmem>>, vector<8x8xbf16>,
    %c0_66 = arith.constant 0 : index
    %c0_67 = arith.constant 0 : index
    %98 = vector.load %arg14[%c0_66, %c0_67] : memref<8x32xbf16, #tpu.memory_space<vmem>>, vector<8x32xbf16>
    %c0_68 = arith.constant 0 : index
    %c0_69 = arith.constant 0 : index
    %99 = vector.load %arg8[%c0_68, %c0_69] : memref<32x32xbf16, #tpu.memory_space<vmem>>, vector<32x32xbf16>
    %cst_70 = arith.constant dense<0.000000e+00> : vector<8x32xf32>
    %100 = tpu.matmul %98, %99, %cst_70 {dimension_numbers = #tpu.dot_dimension_numbers<[1], [0], [0], [1], [0, 0, 1, 1], [], []>} : vector<8x32xbf16>, vector<32x32xbf16>, vector<8x32xf32> -> vector<8x32xf32>
    %c0_71 = arith.constant 0 : index
    %c0_72 = arith.constant 0 : index
    %101 = vector.load %arg9[%c0_71, %c0_72] : memref<1x32xf32, #tpu.memory_space<vmem>>, vector<1x32xf32>
    %102 = vector.broadcast %101 : vector<1x32xf32> to vector<8x32xf32>
    %103 = arith.addf %100, %102 : vector<8x32xf32>
    %c0_73 = arith.constant 0 : index
    %c0_74 = arith.constant 0 : index
    %c0_75 = arith.constant 0 : index
    %104 = vector.load %arg10[%c0_73, %c0_74, %c0_75] : memref<1x8x32xf32, #tpu.memory_space<vmem>>, vector<1x8x32xf32>
    %105 = vector.shape_cast %104 : vector<1x8x32xf32> to vector<8x32xf32>
    %106 = vector.shape_cast %103 : vector<8x32xf32> to vector<1x8x32xf32>
    tpu.vector_store %arg10[%c0_73, %c0_74, %c0_75], %106 {strides = array<i32>} : memref<1x8x32xf32, #tpu.memory_space<vmem>>, vector<1x8x32xf32>,
    return
  }
  func.func @transform_0(%arg0: i32, %arg1: i32) -> (i32, i32, i32) {
    %c0_i32 = arith.constant 0 : i32
    %c0_i32_0 = arith.constant 0 : i32
    return %arg0, %arg1, %c0_i32 : i32, i32, i32
  }
  func.func @transform_1(%arg0: i32, %arg1: i32) -> (i32, i32, i32) {
    %c0_i32 = arith.constant 0 : i32
    %c0_i32_0 = arith.constant 0 : i32
    %c0_i32_1 = arith.constant 0 : i32
    return %arg0, %c0_i32, %c0_i32_0 : i32, i32, i32
  }
  func.func @transform_2(%arg0: i32, %arg1: i32) -> (i32, i32) {
    %c0_i32 = arith.constant 0 : i32
    %c0_i32_0 = arith.constant 0 : i32
    %c0_i32_1 = arith.constant 0 : i32
    return %c0_i32, %c0_i32_0 : i32, i32
  }
  func.func @transform_3(%arg0: i32, %arg1: i32) -> (i32, i32) {
    %c0_i32 = arith.constant 0 : i32
    %c0_i32_0 = arith.constant 0 : i32
    %c0_i32_1 = arith.constant 0 : i32
    return %c0_i32, %c0_i32_0 : i32, i32
  }
  func.func @transform_4(%arg0: i32, %arg1: i32) -> (i32, i32) {
    %c0_i32 = arith.constant 0 : i32
    %c0_i32_0 = arith.constant 0 : i32
    %c0_i32_1 = arith.constant 0 : i32
    return %c0_i32, %c0_i32_0 : i32, i32
  }
  func.func @transform_5(%arg0: i32, %arg1: i32) -> (i32, i32) {
    %c0_i32 = arith.constant 0 : i32
    %c0_i32_0 = arith.constant 0 : i32
    %c0_i32_1 = arith.constant 0 : i32
    return %c0_i32, %c0_i32_0 : i32, i32
  }
  func.func @transform_6(%arg0: i32, %arg1: i32) -> (i32, i32) {
    %c0_i32 = arith.constant 0 : i32
    %c0_i32_0 = arith.constant 0 : i32
    %c0_i32_1 = arith.constant 0 : i32
    return %c0_i32, %c0_i32_0 : i32, i32
  }
  func.func @transform_7(%arg0: i32, %arg1: i32) -> (i32, i32) {
    %c0_i32 = arith.constant 0 : i32
    %c0_i32_0 = arith.constant 0 : i32
    %c0_i32_1 = arith.constant 0 : i32
    return %c0_i32, %c0_i32_0 : i32, i32
  }
  func.func @transform_8(%arg0: i32, %arg1: i32) -> (i32, i32, i32) {
    %c0_i32 = arith.constant 0 : i32
    %c0_i32_0 = arith.constant 0 : i32
    return %arg0, %arg1, %c0_i32 : i32, i32, i32
  }
}

</mosaic_0001>

<bundles_post_ra>
// kernel: tpu_custom_call.1
= control target key start
LH: loop header
LB: loop body
LE: loop exit
PB: predicated region body
PF: predicated region fallthrough
CT: control target
= control target key end

     0   :  { %s2206_s0 = inlined_call_operand.hbm [shape: f32[2,8,32], index: 0, kind: input, shape index: {}]   ;;  %s2207_s1 = inlined_call_operand.hbm [shape: f32[2,8,32], index: 1, kind: input, shape index: {}]   ;;  %s2208_s2 = inlined_call_operand.hbm [shape: bf16[32,32], index: 2, kind: input, shape index: {}]   ;;  %s2209_s3 = inlined_call_operand.vmem [shape: f32[1,32], index: 3, kind: input, shape index: {}]   ;;  %s2210_s4 = inlined_call_operand.hbm [shape: bf16[32,64], index: 4, kind: input, shape index: {}]   ;;  %s2211_s5 = inlined_call_operand.vmem [shape: f32[1,64], index: 5, kind: input, shape index: {}]   ;;  %s2212_s6 = inlined_call_operand.vmem [shape: bf16[32,32], index: 6, kind: input, shape index: {}]   ;;  %s2213_s7 = inlined_call_operand.vmem [shape: f32[1,32], index: 7, kind: input, shape index: {}]   ;;  %s2214_s8 = inlined_call_operand.hbm [shape: f32[2,8,32], index: 8, kind: output, shape index: {}]  }
   0x1   :  { %2223 = sst [smem:[#allocation25_spill]] %s2208_s2 }
   0x2   :  { %2224 = sst [smem:[#allocation26_spill]] %s2210_s4 }
   0x3   :  { %13 = vsyncpa [#allocation7], 0 }
   0x4   :  { %15 = vsyncpa [#allocation7 + $0x1], 0 }
   0x5   :  { %16 = vsyncpa [#allocation10], 0 }
   0x6   :  { %18 = vsyncpa [#allocation10 + $0x1], 0 }
   0x7   :  { %19 = vsyncpa [#allocation13], 0 }
   0x8   :  { %20 = vsyncpa [#allocation8], 0 }
   0x9   :  { %22 = vsyncpa [#allocation8 + $0x1], 0  ;;  %s1822_s27 = smov 0   ;;  %s1824_s28 = smov 0  }
   0xa   :  { %s1826_s29 = smov 0   ;;  %s1828_s30 = smov 0  }
   0xb   :  { %s1830_s9 = smov 0   ;;  %s1832_s10 = smov 0  }
   0xc LB: > { %2225 = sst [smem:[#allocation20_spill]] %s1739_s27  ;;  %s1853_s11 = sadd.s32 4294967295, %s1759_s10   ;;  %s1759_s10 = sphi %s1832_s10, %s28_s10   ;;  %s1755_s9 = sphi %s1830_s9, %s2252_s9   ;;  %s1751_s30 = sphi %s1828_s30, %s2251_s30   ;;  %s1747_s29 = sphi %s1826_s29, %s2255_s29   ;;  %s1743_s28 = sphi %s1824_s28, %s2254_s28   ;;  %s1739_s27 = sphi %s1822_s27, %s2253_s27  }
   0xd   : > { %2226 = sst [smem:[#allocation21_spill]] %s1755_s9  ;;  %s1266_s12 = sadd.s32 4294967294, %s1759_s10  }
   0xe   : > { %p62_p0 = scmp.ne.s32.totalorder %s1743_s28, %s1739_s27  ;;  %p2215_p1 = scmp.eq.s32.totalorder %s1853_s11, 0 }
   0xf   : > { %p246_p3 = scmp.eq.s32.totalorder %s1266_s12, 1  ;;  %p1267_p5 = scmp.ge.s32.totalorder %s1759_s10, 1 }
  0x10   : > { %p1862_p4 = por %p2215_p1, %p62_p0  ;;  %p253_p7 = scmp.lt.s32.totalorder %s1759_s10, 3 }
  0x11   : > { %p1867_p6 = por %p246_p3, %p62_p0  ;;  %s1761_s16 = smov [#allocation11]  }
  0x12   : > { %s2227_s13 = scalar_select %p1862_p4, 1, 0 }
  0x13   : > { %s2228_s14 = scalar_select %p1867_p6, 1, 0 }
  0x14   : > { %p1872_p8 = pnand %p1267_p5, %p253_p7  ;;  %s265_s17 = sshll.u32 %s1761_s16, 4  ;;  %s1876_s17 = int_to_ptr.vmem [resolvable:$true] %s265_s17 }
  0x15   : > { %2229 = sst [smem:[#allocation22_spill]] %s2228_s14  ;;  %s1762_s19 = smov [#allocation12]  }
  0x16   : > { %s2230_s15 = scalar_select %p1872_p8, 1, 0 }
  0x17   : > { %p1433_p9 = pneg %p1872_p8  ;;  %s281_s20 = sshll.u32 %s1762_s19, 4  ;;  %s1887_s20 = int_to_ptr.vmem [resolvable:$true] %s281_s20 }
  0x18   : > { %s2232_s2 = sld [smem:[#allocation25_spill]] }
  0x19   : > { %p1883_p11 = pnand %p1433_p9, %p2215_p1 }
  0x1b   : > { %p1551_p13 = pneg %p1883_p11 }
  0x1e   : > { %s1549_s23 = scalar_lea.hbm %s2232_s2, 256 }
  0x1f   : > { %p1550_p12 = scmp.ne.s32.totalorder %s2232_s2, %s1549_s23  ;;  %p1556_p5 = scmp.lt.u32.totalorder %s1549_s23, %s2232_s2 }
  0x21   : > { %p1552_p0 = pnand %p1551_p13, %p1550_p12 }
  0x23   : > { %p1553_p3 = pneg %p1552_p0 }
  0x25   : > { %p1558_p7 = pnand %p1556_p5, %p1553_p3 }
  0x27   : > { %1561 = shalt.err (!%p1558_p7)
}
  0x28   : > { %s1562_s16 = scalar_lea.vmem %s1876_s17, 256  ;;  %p1570_p2 = scmp.lt.s32.totalorder %s1876_s17, %s1876_s17 }
  0x29   : > { %p1563_p9 = scmp.ne.s32.totalorder %s1876_s17, %s1562_s16  ;;  %p1571_p12 = scmp.lt.s32.totalorder %s1562_s16, %s1562_s16 }
  0x2b   : > { %p1565_p10 = pnand %p1563_p9, %p1551_p13  ;;  %p1572_p0 = por %p1571_p12, %p1570_p2 }
  0x2d   : > { %p1566_p1 = pneg %p1565_p10 }
  0x2f   : > { %p1573_p6 = pnand %p1572_p0, %p1566_p1 }
  0x31   : > { %1576 = shalt.err (!%p1573_p6)
}
  0x32   : > { %s1763_s19 = smov 64   ;;  %s1764_s21 = smov 4  }
  0x33   : > { %1436 = dma.hbm_to_vmem [thread:$0]  (!%p1883_p11), %s2232_s2, 256, %s1876_s17, [#allocation10], %s1763_s19, %s1763_s19, %s1764_s21  }
  0x34   : > { %s2233_s4 = sld [smem:[#allocation26_spill]] }
  0x3a   : > { %s1577_s26 = scalar_lea.hbm %s2233_s4, 256 }
  0x3b   : > { %p1578_p2 = scmp.ne.s32.totalorder %s2233_s4, %s1577_s26  ;;  %p1584_p10 = scmp.lt.u32.totalorder %s1577_s26, %s2233_s4 }
  0x3d   : > { %p1580_p1 = pnand %p1578_p2, %p1551_p13 }
  0x3f   : > { %p1581_p6 = pneg %p1580_p1 }
  0x41   : > { %p1586_p3 = pnand %p1584_p10, %p1581_p6 }
  0x43   : > { %1589 = shalt.err (!%p1586_p3)
}
  0x44   : > { %s1590_s17 = scalar_lea.vmem %s1887_s20, 256  ;;  %p1598_p12 = scmp.lt.s32.totalorder %s1887_s20, %s1887_s20 }
  0x45   : > { %p1591_p5 = scmp.ne.s32.totalorder %s1887_s20, %s1590_s17  ;;  %p1599_p0 = scmp.lt.s32.totalorder %s1590_s17, %s1590_s17 }
  0x47   : > { %p1593_p7 = pnand %p1591_p5, %p1551_p13  ;;  %p1600_p2 = por %p1599_p0, %p1598_p12 }
  0x49   : > { %p1594_p9 = pneg %p1593_p7 }
  0x4b   : > { %p1601_p1 = pnand %p1600_p2, %p1594_p9 }
  0x4d   : > { %1604 = shalt.err (!%p1601_p1)
}
  0x4e   : > { %1439 = dma.hbm_to_vmem [thread:$0]  (!%p1883_p11), %s2233_s4, 256, %s1887_s20, [#allocation13], %s1763_s19, %s1763_s19, %s1764_s21  }
  0x4f   : > { %s40_s22 = sadd.s32 1, %s1755_s9  ;;  %s49_s23 = sadd.s32 1, %s1747_s29 }
  0x50   : > { %p42_p13 = scmp.ge.s32.totalorder %s40_s22, 2  ;;  %p56_p6 = scmp.ne.s32.totalorder %s1747_s29, %s1743_s28 }
  0x51   : > { %p57_p10 = scmp.eq.s32.totalorder %s1759_s10, 0  ;;  %p1453_p3 = scmp.lt.s32.totalorder %s1759_s10, 2 }
  0x52   : > { %s2257_s22 = smov (%p42_p13, %s40_s22), 0  ;;  %p2235_p7 = scmp.eq.s32.totalorder %s1853_s11, 1 }
  0x53   : > { %2234 = sst [smem:[#allocation23_spill]] %s2257_s22  ;;  %p58_p5 = por %p57_p10, %p56_p6 }
  0x54   : > { %p1951_p9 = por %p2235_p7, %p56_p6  ;;  %s44_s24 = ssub.s32 %s1755_s9, %s2257_s22 }
  0x55   : > { %s304_s25 = sand.u32 1, %s1747_s29   ;;  %p47_p12 = scmp.eq.s32.totalorder %s44_s24, 0 }
  0x56   : > { %s2236_s18 = scalar_select %p1951_p9, 1, 0 }
  0x57   : > { %s1958_s20 = sshll.u32 %s304_s25, 3  ;;  %s1272_s19 = sshll.u32 %s1755_s9, 7 }
  0x58   : > { %s1962_s21 = scalar_select %p47_p12, %s1747_s29, %s49_s23  }
  0x59   : > { %s1967_s16 = scalar_lea.hbm %s2206_s0, %s1272_s19  ;;  %s308_s17 = scalar_lea.vmem [#allocation6], %s1958_s20 }
  0x5a   : > { %2237 = sst [smem:[#allocation24_spill]] %s1962_s21  ;;  %s316_s27 = sshll.u32 %s308_s17, 4  ;;  %s1976_s27 = int_to_ptr.vmem [resolvable:$true] %s316_s27 }
  0x5b   : > { %p1972_p11 = pnand %p1453_p3, %p58_p5  ;;  %s1981_s26 = scalar_lea.hbm %s2207_s1, %s1272_s19 }
  0x5c   : > { %s305_s12 = scalar_lea.sflag [#allocation7], %s304_s25  ;;  %s1605_s2 = scalar_lea.hbm %s1967_s16, 128 }
  0x5d   : > { %p1606_p0 = scmp.ne.s32.totalorder %s1967_s16, %s1605_s2  ;;  %p1607_p2 = pneg %p1972_p11 }
  0x5e   : > { %s1610_s22 = scalar_lea.hbm %s2206_s0, 256  ;;  %p1611_p6 = scmp.lt.u32.totalorder %s1967_s16, %s2206_s0 }
  0x5f   : > { %p1608_p1 = pnand %p1607_p2, %p1606_p0  ;;  %p1612_p10 = scmp.lt.u32.totalorder %s1610_s22, %s1605_s2 }
  0x60   : > { %p1614_p5 = scmp.lt.u32.totalorder %s1605_s2, %s1967_s16 }
  0x61   : > { %p1609_p13 = pneg %p1608_p1  ;;  %p1613_p3 = por %p1612_p10, %p1611_p6 }
  0x63   : > { %p1615_p7 = por %p1614_p5, %p1613_p3 }
  0x65   : > { %p1616_p12 = pnand %p1615_p7, %p1609_p13 }
  0x67   : > { %1619 = shalt.err (!%p1616_p12)
}
  0x68   : > { %s1620_s25 = scalar_lea.vmem %s1976_s27, 128  ;;  %s1765_s4 = smov [#allocation6]  }
  0x69   : > { %p1621_p0 = scmp.ne.s32.totalorder %s1976_s27, %s1620_s25  ;;  %s1625_s19 = sshll.u32 %s1765_s4, 4  ;;  %s1626_s19 = int_to_ptr.vmem [resolvable:$false] %s1625_s19 }
  0x6a   : > { %s1627_s9 = scalar_lea.vmem %s1626_s19, 256  ;;  %p1628_p4 = scmp.lt.s32.totalorder %s1976_s27, %s1626_s19 }
  0x6b   : > { %p1623_p1 = pnand %p1621_p0, %p1607_p2  ;;  %p1629_p6 = scmp.lt.s32.totalorder %s1627_s9, %s1620_s25 }
  0x6d   : > { %p1624_p9 = pneg %p1623_p1  ;;  %p1630_p10 = por %p1629_p6, %p1628_p4 }
  0x6f   : > { %p1631_p3 = pnand %p1630_p10, %p1624_p9 }
  0x71   : > { %1634 = shalt.err (!%p1631_p3)
}
  0x72   : > { %1443 = dma.hbm_to_vmem [thread:$0]  (!%p1972_p11), %s1967_s16, 128, %s1976_s27, %s305_s12  }
  0x73   : > { %s323_s2 = sand.u32 1, %s1759_s10   ;;  %s327_s22 = scalar_lea.vmem [#allocation9], %s1958_s20 }
  0x74   : > { %s334_s21 = sshll.u32 %s327_s22, 4  ;;  %s324_s23 = scalar_lea.sflag [#allocation10], %s323_s2  ;;  %s335_s21 = int_to_ptr.vmem [resolvable:$true] %s334_s21 }
  0x75   : > { %s1635_s24 = scalar_lea.hbm %s1981_s26, 128  ;;  %s1640_s4 = scalar_lea.hbm %s2207_s1, 256 }
  0x76   : > { %p1636_p4 = scmp.ne.s32.totalorder %s1981_s26, %s1635_s24  ;;  %p1641_p5 = scmp.lt.u32.totalorder %s1981_s26, %s2207_s1 }
  0x77   : > { %p1642_p7 = scmp.lt.u32.totalorder %s1640_s4, %s1635_s24  ;;  %p1644_p0 = scmp.lt.u32.totalorder %s1635_s24, %s1981_s26 }
  0x78   : > { %p1638_p9 = pnand %p1636_p4, %p1607_p2 }
  0x79   : > { %p1643_p12 = por %p1642_p7, %p1641_p5 }
  0x7a   : > { %p1639_p13 = pneg %p1638_p9 }
  0x7b   : > { %p1645_p1 = por %p1644_p0, %p1643_p12 }
  0x7d   : > { %p1646_p6 = pnand %p1645_p1, %p1639_p13 }
  0x7f   : > { %1649 = shalt.err (!%p1646_p6)
}
  0x80   : > { %s1650_s20 = scalar_lea.vmem %s335_s21, 128  ;;  %s1766_s16 = smov [#allocation9]  }
  0x81   : > { %p1651_p10 = scmp.ne.s32.totalorder %s335_s21, %s1650_s20  ;;  %s1655_s27 = sshll.u32 %s1766_s16, 4  ;;  %s1656_s27 = int_to_ptr.vmem [resolvable:$false] %s1655_s27 }
  0x82   : > { %s1657_s12 = scalar_lea.vmem %s1656_s27, 256  ;;  %p1658_p9 = scmp.lt.s32.totalorder %s335_s21, %s1656_s27 }
  0x83   : > { %p1653_p3 = pnand %p1651_p10, %p1607_p2  ;;  %p1659_p8 = scmp.lt.s32.totalorder %s1657_s12, %s1650_s20 }
  0x85   : > { %p1654_p4 = pneg %p1653_p3  ;;  %p1660_p5 = por %p1659_p8, %p1658_p9 }
  0x87   : > { %p1661_p7 = pnand %p1660_p5, %p1654_p4 }
  0x89   : > { %1664 = shalt.err (!%p1661_p7)
}
  0x8a   : > { %1446 = dma.hbm_to_vmem [thread:$0]  (!%p1972_p11), %s1981_s26, 128, %s335_s21, %s324_s23  }
  0x8b   : > { %p2239_p13 = scmp.ne.s32.totalorder %s2230_s15, 0 }
  0x8c   : > { %s2032_s2 = sand.u32 (!%p2239_p13), 1, %s1743_s28   ;;  %p2240_p8 = scmp.ne.s32.totalorder (!%p2239_p13), %s2227_s13, 0 }
  0x8d   : > { %343 = sbr.rel (%p2239_p13) target bundleno = 1628 (0x65c), region = 52  ;;  %s2035_s22 = sshll.u32 (!%p2239_p13), %s2032_s2, 3 }
  0x8e   : > { %s346_s24 = scalar_lea.sflag (!%p2239_p13), [#allocation7], %s2032_s2  ;;  %s349_s17 = scalar_lea.vmem (!%p2239_p13), [#allocation6], %s2035_s22 }
  0x94   : > { %1718 = dma.done.wait (%p2240_p8), %s346_s24, 128  }
  0x95   : > { %1720 = vsyncadd (%p2240_p8), %s346_s24, 4294967168  ;;  %s354_s15 = sand.u32 1, %s1853_s11   ;;  %s358_s26 = scalar_lea.vmem [#allocation9], %s2035_s22 }
  0x96   : > { %s355_s14 = scalar_lea.sflag [#allocation10], %s354_s15 }
  0x97   : > { %1722 = dma.done.wait (%p2240_p8), %s355_s14, 128  }
  0x98   : > { %1724 = vsyncadd (%p2240_p8), %s355_s14, 4294967168  ;;  %p2241_p11 = scmp.eq.s32.totalorder %s1853_s11, 0 }
  0x9a   : > { %1726 = dma.done.wait (%p2241_p11), [#allocation10], 256   ;;  %p2242_p2 = pmov %p2241_p11 }
  0x9c   : > { %1728 = vsyncadd (%p2242_p2), [#allocation10], 4294967040  ;;  %p2243_p12 = pmov %p2242_p2 }
  0x9d   : > { %p2244_p0 = pmov %p2242_p2 }
  0x9e   : > { %1730 = dma.done.wait (%p2243_p12), [#allocation13], 256  }
  0x9f   : > { %1732 = vsyncadd (%p2244_p0), [#allocation13], 4294967040  ;;  %v1767_v0 = vmov 0.0   ;;  %vm1768_vm0 = vmmov 0   ;;  %v1518_v1 = vld [vmem:[#allocation12] sm:$0xff]   ;;  %v1519_v2 = vld [vmem:[#allocation11] sm:$0xff]  }
  0xa0   : > { %1355 = vmatprep.subr.bf16.mxu1 %v1767_v0  ;;  %1347 = vmatprep.subr.bf16.mxu0 %v1767_v0  ;;  %v1520_v3 = vld [vmem:[#allocation12 + $0x8] sm:$0xff]   ;;  %v1521_v4 = vld [vmem:[#allocation11 + $0x8] sm:$0xff]   ;;  %vm432_vm1 = vcmask 261120   ;;  %v1285_v9 = vld [vmem:[%s2211_s5] ss:$0 sm:$0xff]  ;;  %vm478_vm2 = vcmask 257024  }
  0xa1   : > { %1359 = vmatprep.mubr.msk.bf16.mxu1 %vm1768_vm0, %v1767_v0  ;;  %1351 = vmatprep.mubr.msk.bf16.mxu0 %vm1768_vm0, %v1767_v0  ;;  %v407_v5 = vld [vmem:[%s358_s26] sm:$0xff]  ;;  %v405_v6 = vld [vmem:[%s349_s17] sm:$0xff]  ;;  %vm558_vm3 = vcmask 64512   ;;  %s1769_s25 = smov 112   ;;  %s1770_s4 = smov 120   ;;  %vm620_vm4 = vcmask 1043456  }
  0xa2   : > { %1356 = vmatpush3.bf16.msra.mxu1 %v1518_v1  ;;  %1348 = vmatpush3.bf16.msra.mxu0 %v1519_v2  ;;  %v408_v7 = vpack.c.bf16 %v407_v5, %v407_v5  ;;  %v406_v8 = vpack.c.bf16 %v405_v6, %v405_v6  ;;  %v1281_v10 = vld [vmem:[%s2209_s3] ss:$0 sm:$0xff]  ;;  %s1771_s19 = smov 104   ;;  %s1772_s9 = smov 96   ;;  %vm665_vm5 = vcmask 60416   ;;  %vm796_vm6 = vcmask 126016  }
  0xa3   : > { %1357 = vmatprep.subr.bf16.mxu1 %v1767_v0  ;;  %1349 = vmatprep.subr.bf16.mxu0 %v1767_v0  ;;  %s1773_s20 = smov 8   ;;  %s1774_s17 = smov 16   ;;  %vm927_vm7 = vcmask 191616   ;;  %vm1058_vm8 = vcmask 257216  }
  0xa4   : > { %s1775_s15 = smov 24   ;;  %s1315_s11 = sshll.u32 %s1751_s30, 7 }
  0xa5   : > { %s403_s13 = scalar_lea.vmem [#allocation14], %s2035_s22  ;;  %s1129_s30 = scalar_lea.sflag [#allocation8], %s2032_s2 }
  0xa6   : > { %1358 = vmatpush3.bf16.msra.mxu1 %v1520_v3  ;;  %1350 = vmatpush3.bf16.msra.mxu0 %v1521_v4  ;;  %s1143_s21 = sshll.u32 %s403_s13, 4  ;;  %p2245_p6 = scmp.ne.s32.totalorder %s2236_s18, 0  ;;  %s2158_s21 = int_to_ptr.vmem [resolvable:$true] %s1143_s21 }
  0xa7   : > { %1369 = vmatprep.subr.bf16.mxu1 %v1767_v0  ;;  %1363 = vmatprep.subr.bf16.mxu0 %v1767_v0  ;;  %s1665_s22 = scalar_lea.vmem %s2158_s21, 128 }
  0xa8   : > { %p1666_p1 = scmp.ne.s32.totalorder %s2158_s21, %s1665_s22 }
  0xa9   : > { %1360 = vmatmul.mubr.msk.bf16.vlgmr.msra.gmra.mrb[0].mxu1 %vm432_vm1, %v408_v7  ;;  %1352 = vmatmul.mubr.msk.bf16.vlgmr.msra.gmra.mrb[0].mxu0 %vm432_vm1, %v406_v8 }
  0xaa   : > { %1371 = vmatprep.mubr.msk.bf16.mxu1 %vm1768_vm0, %v1767_v0  ;;  %1365 = vmatprep.mubr.msk.bf16.mxu0 %vm1768_vm0, %v1767_v0  ;;  %p1667_p10 = pnand %p1666_p1, %p2245_p6 }
  0xac   : > { %p1668_p3 = pneg %p1667_p10 }
 0x17c   : > { %v540_v11 = vpop.f32.mrb[0].mxu1  ;;  %v470_v14 = vpop.f32.mrb[0].mxu0 }
 0x17d   : > { %v541_v12 = vadd.f32 %v1285_v9, %v540_v11  ;;  %v1361_v13 = vpop.f32.mrb[1].mxu1  ;;  %v471_v15 = vadd.f32 %v1281_v10, %v470_v14  ;;  %v1353_v17 = vpop.f32.mrb[1].mxu0 }
 0x17e   : > { %v543_v16 = vpop.f32.mrb[2].mxu1  ;;  %v473_v20 = vpop.f32.mrb[2].mxu0 }
 0x17f   : > { %v2079_v18 = vpack.c.bf16 %v541_v12, %v541_v12  ;;  %v1362_v19 = vpop.f32.mrb[3].mxu1  ;;  %v476_v21 = vmul.f32 0.35355338, %v471_v15  ;;  %v1354_v22 = vpop.f32.mrb[3].mxu0 }
 0x181   : > { %547 = vst.msk [vmem:[#allocation3] sm:$0xf] %vm478_vm2, %v2079_v18  ;;  %v477_v23 = vpack.c.bf16 %v476_v21, %v476_v21 }
 0x183   : > { %479 = vst.msk [vmem:[#allocation2] sm:$0xf] %vm478_vm2, %v477_v23 }
 0x188   : > { %v556_v24 = vld [vmem:[#allocation3] sm:$0xf] }
 0x189   : > { %v1522_v25 = vld [vmem:[#allocation3] ss:$0 sps:$4 sm:$0xff]   ;;  %v563_v26 = vsel %vm558_vm3, %v556_v24, 0 }
 0x18a   : > { %v1523_v27 = vld [vmem:[#allocation3] ss:$0 sps:$4 sm:$0xff]   ;;  %1364 = vmatpush3.bf16.xpose.msra.mxu0 %v563_v26  ;;  %809 = vrot.lane.b32.xlu1 %v1522_v25, %s1769_s25  ;;  %v1524_v28 = vld [vmem:[#allocation2] ss:$0 sps:$4 sm:$0xff]  }
 0x18b   : > { %678 = vrot.lane.b32.xlu0 %v1523_v27, %s1770_s4  ;;  %1375 = vmatprep.subr.bf16.mxu0 %v1767_v0  ;;  %v1525_v29 = vld [vmem:[#allocation2] ss:$0 sps:$4 sm:$0xff]   ;;  %v1527_v32 = vld [vmem:[#allocation3] ss:$0 sps:$4 sm:$0xff]  }
 0x18c   : > { %v555_v30 = vld [vmem:[#allocation2] sm:$0xf] }
 0x18d   : > { %v1526_v31 = vld [vmem:[#allocation2] ss:$0 sps:$4 sm:$0xff]  }
 0x18e   : > { %804 = vrot.lane.b32.xlu1 %v1524_v28, %s1769_s25 }
 0x18f   : > { %673 = vrot.lane.b32.xlu0 %v1525_v29, %s1770_s4 }
 0x191   : > { %1366 = vmatmul.mubr.msk.bf16.vlgmr.msra.gmra.mrb[4].mxu0 %vm558_vm3, %v555_v30 }
 0x192   : > { %935 = vrot.lane.b32.xlu1 %v1526_v31, %s1771_s19  ;;  %1377 = vmatprep.mubr.msk.bf16.mxu0 %vm1768_vm0, %v1767_v0 }
 0x193   : > { %940 = vrot.lane.b32.xlu0 %v1527_v32, %s1771_s19 }
 0x1fc   : > { %v810_v35 = vpop.permute.xlu1 %809 }
 0x1fd   : > { %v679_v33 = vpop.permute.xlu0 %678  ;;  %v815_v37 = vsel %vm558_vm3, %v810_v35, 0 }
 0x1fe   : > { %v684_v34 = vsel %vm558_vm3, %v679_v33, 0 }
 0x1ff   : > { %1376 = vmatpush3.bf16.xpose.msra.mxu0 %v684_v34 }
 0x200   : > { %1387 = vmatprep.subr.bf16.mxu0 %v1767_v0  ;;  %v805_v39 = vpop.permute.xlu1 %804 }
 0x201   : > { %v674_v36 = vpop.permute.xlu0 %673 }
 0x204   : > { %v936_v41 = vpop.permute.xlu1 %935 }
 0x205   : > { %v941_v38 = vpop.permute.xlu0 %940 }
 0x206   : > { %1378 = vmatmul.mubr.msk.bf16.vlgmr.msra.gmra.mrb[8].mxu0 %vm558_vm3, %v674_v36  ;;  %v946_v40 = vsel %vm558_vm3, %v941_v38, 0 }
 0x207   : > { %1388 = vmatpush3.bf16.xpose.msra.mxu0 %v815_v37  ;;  %1389 = vmatprep.mubr.msk.bf16.mxu0 %vm1768_vm0, %v1767_v0 }
 0x208   : > { %1399 = vmatprep.subr.bf16.mxu0 %v1767_v0 }
 0x20e   : > { %1390 = vmatmul.mubr.msk.bf16.vlgmr.msra.gmra.mrb[12].mxu0 %vm558_vm3, %v805_v39 }
 0x20f   : > { %1400 = vmatpush3.bf16.xpose.msra.mxu0 %v946_v40  ;;  %1401 = vmatprep.mubr.msk.bf16.mxu0 %vm1768_vm0, %v1767_v0 }
 0x210   : > { %1411 = vmatprep.subr.bf16.mxu0 %v1767_v0 }
 0x216   : > { %1402 = vmatmul.mubr.msk.bf16.vlgmr.msra.gmra.mrb[16].mxu0 %vm558_vm3, %v936_v41 }
 0x217   : > { %1415 = vmatprep.mubr.msk.bf16.mxu0 %vm1768_vm0, %v1767_v0 }
 0x264   : > { %v599_v42 = vpop.f32.mrb[4].mxu0 }
 0x265   : > { %v1367_v43 = vpop.f32.mrb[5].mxu0  ;;  %v605_v44 = vsel %vm558_vm3, %v599_v42, -inf }
 0x266   : > { %606 = vmax.xlane.f32.xlu0 %v605_v44  ;;  %v602_v45 = vpop.f32.mrb[6].mxu0 }
 0x267   : > { %v1368_v46 = vpop.f32.mrb[7].mxu0 }
 0x2d9   : > { %v720_v47 = vpop.f32.mrb[8].mxu0 }
 0x2da   : > { %v1379_v48 = vpop.f32.mrb[9].mxu0  ;;  %v726_v49 = vsel %vm558_vm3, %v720_v47, -inf }
 0x2db   : > { %727 = vmax.xlane.f32.xlu1 %v726_v49  ;;  %v723_v50 = vpop.f32.mrb[10].mxu0 }
 0x2dc   : > { %v1380_v51 = vpop.f32.mrb[11].mxu0 }
 0x2e1   : > { %v851_v52 = vpop.f32.mrb[12].mxu0 }
 0x2e2   : > { %v1391_v53 = vpop.f32.mrb[13].mxu0  ;;  %v857_v54 = vsel %vm558_vm3, %v851_v52, -inf }
 0x2e3   : > { %858 = vmax.xlane.f32.xlu0 %v857_v54  ;;  %v854_v55 = vpop.f32.mrb[14].mxu0 }
 0x2e4   : > { %v1392_v56 = vpop.f32.mrb[15].mxu0 }
 0x2e9   : > { %v982_v57 = vpop.f32.mrb[16].mxu0 }
 0x2ea   : > { %v1403_v58 = vpop.f32.mrb[17].mxu0  ;;  %v988_v59 = vsel %vm558_vm3, %v982_v57, -inf }
 0x2eb   : > { %989 = vmax.xlane.f32.xlu0 %v988_v59  ;;  %v985_v60 = vpop.f32.mrb[18].mxu0  ;;  %v1532_v59 = vld [vmem:[%s2212_s6 + $0x8] sm:$0xff]  }
 0x2ec   : > { %551 = vrot.lane.b32.xlu1 %v2079_v18, %s1772_s9  ;;  %v1404_v61 = vpop.f32.mrb[19].mxu0 }
 0x2f3   : > { %v607_v62 = vpop.xlane.xlu0 %606 }
 0x2f4   : > { %v608_v63 = vsub.f32 %v599_v42, %v607_v62 }
 0x2f6   : > { %v609_v1 = vmul.f32 1.442695, %v608_v63 }
 0x2f8   : > { %1533 = vpow2.f32 %v609_v1 }
 0x302   : > { %v1534_v2 = vpop.eup %1533 }
 0x303   : > { %v611_v3 = vsel %vm558_vm3, %v1534_v2, 0.0 }
 0x304   : > { %612 = vadd.xlane.f32.xlu0 %v611_v3 }
 0x368   : > { %v728_v4 = vpop.xlane.xlu1 %727 }
 0x369   : > { %v729_v5 = vsub.f32 %v720_v47, %v728_v4 }
 0x36b   : > { %v730_v6 = vmul.f32 1.442695, %v729_v5 }
 0x36c   : > { %v552_v7 = vpop.permute.xlu1 %551 }
 0x36d   : > { %1535 = vpow2.f32 %v730_v6  ;;  %554 = vst.msk [vmem:[#allocation4] sm:$0xf] %vm478_vm2, %v552_v7 }
 0x370   : > { %v859_v8 = vpop.xlane.xlu0 %858 }
 0x371   : > { %v860_v9 = vsub.f32 %v851_v52, %v859_v8 }
 0x373   : > { %v861_v10 = vmul.f32 1.442695, %v860_v9  ;;  %v1310_v9 = vld [vmem:[%s2213_s7] ss:$0 sm:$0xff] }
 0x374   : > { %v557_v11 = vld [vmem:[#allocation4] sm:$0xf] }
 0x375   : > { %v1528_v12 = vld [vmem:[#allocation4] ss:$0 sps:$4 sm:$0xff]   ;;  %1537 = vpow2.f32 %v861_v10  ;;  %v622_v13 = vsel %vm620_vm4, %v557_v11, 0 }
 0x376   : > { %1370 = vmatpush3.bf16.msra.mxu1 %v622_v13  ;;  %741 = vrot.lane.b32.xlu1 %v1528_v12, %s1770_s4  ;;  %v1529_v17 = vld [vmem:[#allocation4] ss:$0 sps:$4 sm:$0xff]   ;;  %s2156_s4 = scalar_lea.hbm %s2214_s8, %s1315_s11 }
 0x377   : > { %v1536_v14 = vpop.eup %1535  ;;  %1381 = vmatprep.subr.bf16.mxu1 %v1767_v0  ;;  %v1530_v27 = vld [vmem:[#allocation4] ss:$0 sps:$4 sm:$0xff]  }
 0x378   : > { %v990_v15 = vpop.xlane.xlu0 %989  ;;  %v732_v16 = vsel %vm558_vm3, %v1536_v14, 0.0 }
 0x379   : > { %v991_v18 = vsub.f32 %v982_v57, %v990_v15  ;;  %733 = vadd.xlane.f32.xlu0 %v732_v16  ;;  %v1531_v57 = vld [vmem:[%s2212_s6] sm:$0xff]  }
 0x37a   : > { %1003 = vrot.lane.b32.xlu1 %v1529_v17, %s1771_s19  ;;  %1412 = vmatpush3.bf16.msra.mxu0 %v1531_v57  ;;  %s1776_s19 = smov [#allocation14]  }
 0x37b   : > { %v992_v19 = vmul.f32 1.442695, %v991_v18  ;;  %1413 = vmatprep.subr.bf16.mxu0 %v1767_v0  ;;  %s1669_s9 = sshll.u32 %s1776_s19, 4  ;;  %s1670_s9 = int_to_ptr.vmem [resolvable:$false] %s1669_s9 }
 0x37c   : > { %p1672_p4 = scmp.lt.s32.totalorder %s2158_s21, %s1670_s9 }
 0x37d   : > { %1539 = vpow2.f32 %v992_v19 }
 0x37e   : > { %1414 = vmatpush3.bf16.msra.mxu0 %v1532_v59 }
 0x37f   : > { %v1538_v20 = vpop.eup %1537 }
 0x380   : > { %v863_v21 = vsel %vm558_vm3, %v1538_v20, 0.0 }
 0x381   : > { %864 = vadd.xlane.f32.xlu0 %v863_v21 }
 0x387   : > { %v1540_v22 = vpop.eup %1539 }
 0x388   : > { %v994_v23 = vsel %vm558_vm3, %v1540_v22, 0.0 }
 0x389   : > { %995 = vadd.xlane.f32.xlu0 %v994_v23 }
 0x391   : > { %v613_v24 = vpop.xlane.xlu0 %612 }
 0x392   : > { %1541 = vrcp.f32 %v613_v24 }
 0x39c   : > { %v1542_v25 = vpop.eup %1541 }
 0x39d   : > { %v615_v26 = vmul.f32 %v1542_v25, %v1534_v2 }
 0x39f   : > { %872 = vrot.lane.b32.xlu0 %v1530_v27, %s1769_s25  ;;  %v616_v28 = vpack.c.bf16 %v615_v26, %v615_v26 }
 0x3a1   : > { %1372 = vmatmul.mubr.msk.bf16.vlgmr.msra.gmra.mrb[4].mxu1 %vm558_vm3, %v616_v28 }
 0x3a2   : > { %1383 = vmatprep.mubr.msk.bf16.mxu1 %vm1768_vm0, %v1767_v0 }
 0x3e8   : > { %v742_v29 = vpop.permute.xlu1 %741 }
 0x3e9   : > { %v747_v30 = vsel %vm620_vm4, %v742_v29, 0 }
 0x3ea   : > { %1382 = vmatpush3.bf16.msra.mxu1 %v747_v30 }
 0x3eb   : > { %1393 = vmatprep.subr.bf16.mxu1 %v1767_v0 }
 0x3ec   : > { %v1004_v41 = vpop.permute.xlu1 %1003 }
 0x3ed   : > { %v1009_v43 = vsel %vm620_vm4, %v1004_v41, 0 }
 0x406   : > { %v734_v31 = vpop.xlane.xlu0 %733 }
 0x407   : > { %1543 = vrcp.f32 %v734_v31 }
 0x40e   : > { %v865_v32 = vpop.xlane.xlu0 %864 }
 0x40f   : > { %1545 = vrcp.f32 %v865_v32 }
 0x411   : > { %v1544_v33 = vpop.eup %1543 }
 0x412   : > { %v736_v34 = vmul.f32 %v1544_v33, %v1536_v14 }
 0x414   : > { %v737_v35 = vpack.c.bf16 %v736_v34, %v736_v34 }
 0x416   : > { %1384 = vmatmul.mubr.msk.bf16.vlgmr.msra.gmra.mrb[8].mxu1 %vm558_vm3, %v737_v35  ;;  %v996_v36 = vpop.xlane.xlu0 %995 }
 0x417   : > { %1547 = vrcp.f32 %v996_v36  ;;  %1395 = vmatprep.mubr.msk.bf16.mxu1 %vm1768_vm0, %v1767_v0 }
 0x419   : > { %v1546_v37 = vpop.eup %1545 }
 0x41a   : > { %v867_v38 = vmul.f32 %v1546_v37, %v1538_v20  ;;  %v873_v39 = vpop.permute.xlu0 %872 }
 0x41b   : > { %v878_v40 = vsel %vm620_vm4, %v873_v39, 0 }
 0x41c   : > { %1394 = vmatpush3.bf16.msra.mxu1 %v878_v40  ;;  %v868_v42 = vpack.c.bf16 %v867_v38, %v867_v38 }
 0x41d   : > { %1405 = vmatprep.subr.bf16.mxu1 %v1767_v0 }
 0x41f   : > { %1396 = vmatmul.mubr.msk.bf16.vlgmr.msra.gmra.mrb[12].mxu1 %vm558_vm3, %v868_v42 }
 0x420   : > { %1406 = vmatpush3.bf16.msra.mxu1 %v1009_v43  ;;  %1407 = vmatprep.mubr.msk.bf16.mxu1 %vm1768_vm0, %v1767_v0 }
 0x421   : > { %v1548_v44 = vpop.eup %1547 }
 0x422   : > { %v998_v45 = vmul.f32 %v1548_v44, %v1540_v22 }
 0x424   : > { %v999_v46 = vpack.c.bf16 %v998_v45, %v998_v45 }
 0x427   : > { %1408 = vmatmul.mubr.msk.bf16.vlgmr.msra.gmra.mrb[16].mxu1 %vm558_vm3, %v999_v46 }
 0x474   : > { %v658_v47 = vpop.f32.mrb[4].mxu1 }
 0x475   : > { %v664_v48 = vpack.c.bf16 %v658_v47, %v658_v47  ;;  %v1373_v49 = vpop.f32.mrb[5].mxu1 }
 0x476   : > { %v661_v50 = vpop.f32.mrb[6].mxu1 }
 0x477   : > { %666 = vst.msk [vmem:[#allocation5] sm:$0xf] %vm665_vm5, %v664_v48  ;;  %v1374_v51 = vpop.f32.mrb[7].mxu1 }
 0x4e9   : > { %v783_v52 = vpop.f32.mrb[8].mxu1 }
 0x4ea   : > { %v1319_v53 = vpack.c.bf16 %v783_v52, %v783_v52  ;;  %v1385_v54 = vpop.f32.mrb[9].mxu1 }
 0x4eb   : > { %v786_v55 = vpop.f32.mrb[10].mxu1 }
 0x4ec   : > { %793 = vrot.lane.b32.xlu1 %v1319_v53, %s1773_s20  ;;  %v1386_v56 = vpop.f32.mrb[11].mxu1  ;;  %s1671_s20 = scalar_lea.vmem %s1670_s9, 256 }
 0x4ed   : > { %p1673_p9 = scmp.lt.s32.totalorder %s1671_s20, %s1665_s22 }
 0x4ef   : > { %p1674_p5 = por %p1673_p9, %p1672_p4 }
 0x4f1   : > { %p1675_p7 = pnand %p1674_p5, %p1668_p3 }
 0x4f2   : > { %v914_v58 = vpop.f32.mrb[12].mxu1 }
 0x4f3   : > { %v1320_v60 = vpack.c.bf16 %v914_v58, %v914_v58  ;;  %v1397_v61 = vpop.f32.mrb[13].mxu1 }
 0x4f4   : > { %v917_v62 = vpop.f32.mrb[14].mxu1 }
 0x4f5   : > { %924 = vrot.lane.b32.xlu1 %v1320_v60, %s1774_s17  ;;  %v1398_v63 = vpop.f32.mrb[15].mxu1 }
 0x4fa   : > { %v1045_v1 = vpop.f32.mrb[16].mxu1 }
 0x4fb   : > { %v1321_v2 = vpack.c.bf16 %v1045_v1, %v1045_v1  ;;  %v1409_v3 = vpop.f32.mrb[17].mxu1 }
 0x4fc   : > { %v1048_v4 = vpop.f32.mrb[18].mxu1 }
 0x4fd   : > { %1055 = vrot.lane.b32.xlu1 %v1321_v2, %s1775_s15  ;;  %v1410_v5 = vpop.f32.mrb[19].mxu1 }
 0x55e   : > { %v794_v6 = vpop.permute.xlu1 %793 }
 0x55f   : > { %797 = vst.msk [vmem:[#allocation5] sm:$0xf] %vm796_vm6, %v794_v6 }
 0x567   : > { %v925_v7 = vpop.permute.xlu1 %924 }
 0x568   : > { %928 = vst.msk [vmem:[#allocation5] sm:$0xf] %vm927_vm7, %v925_v7 }
 0x56f   : > { %v1056_v0 = vpop.permute.xlu1 %1055 }
 0x570   : > { %1059 = vst.msk [vmem:[#allocation5] sm:$0xf] %vm1058_vm8, %v1056_v0 }
 0x577   : > { %v1060_v8 = vld [vmem:[#allocation5] sm:$0xf] }
 0x578   : > { %1416 = vmatmul.mubr.msk.bf16.vlgmr.msra.gmra.mrb[20].mxu0 %vm432_vm1, %v1060_v8 }
 0x64b   : > { %v1121_v10 = vpop.f32.mrb[20].mxu0 }
 0x64c   : > { %v1122_v11 = vadd.f32 %v1310_v9, %v1121_v10  ;;  %v1417_v12 = vpop.f32.mrb[21].mxu0 }
 0x64d   : > { %v1124_v13 = vpop.f32.mrb[22].mxu0 }
 0x64e   : > { %v1418_v14 = vpop.f32.mrb[23].mxu0  ;;  %1127 = vst.msk [vmem:[%s403_s13] sm:$0xff] %vm432_vm1, %v1122_v11 }
 0x64f   : > { %1678 = shalt.err (!%p1675_p7)
}
 0x650   : > { %s1679_s2 = scalar_lea.hbm %s2156_s4, 128  ;;  %s1683_s12 = scalar_lea.hbm %s2214_s8, 256 }
 0x651   : > { %p1680_p13 = scmp.ne.s32.totalorder %s2156_s4, %s1679_s2  ;;  %p1684_p2 = scmp.lt.u32.totalorder %s2156_s4, %s2214_s8 }
 0x652   : > { %p1685_p12 = scmp.lt.u32.totalorder %s1683_s12, %s1679_s2  ;;  %p1687_p1 = scmp.lt.u32.totalorder %s1679_s2, %s2156_s4 }
 0x653   : > { %p1681_p8 = pnand %p1680_p13, %p2245_p6 }
 0x654   : > { %p1686_p0 = por %p1685_p12, %p1684_p2 }
 0x655   : > { %p1682_p11 = pneg %p1681_p8 }
 0x656   : > { %p1688_p10 = por %p1687_p1, %p1686_p0 }
 0x658   : > { %p1689_p3 = pnand %p1688_p10, %p1682_p11 }
 0x65a   : > { %1692 = shalt.err (!%p1689_p3)
}
 0x65b   : > { %1431 = dma.vmem_to_hbm [thread:$0]  (%p2245_p6), %s2158_s21, 128, %s2156_s4, %s1129_s30  }
 0x65c PF: > { %s2246_s15 = sld [smem:[#allocation20_spill]]  ;;  %s2247_s14 = sld [smem:[#allocation22_spill]] }
 0x65d   : > { %p2249_p9 = scmp.ge.s32.totalorder %s1759_s10, 2 }
 0x662   : > { %s1155_s26 = sand.u32 1, %s2246_s15   ;;  %p2248_p4 = scmp.ne.s32.totalorder %s2247_s14, 0 }
 0x663   : > { %s1156_s11 = scalar_lea.sflag [#allocation8], %s1155_s26 }
 0x664   : > { %p1448_p5 = pnand %p2249_p9, %p2248_p4 }
 0x666   : > { %1734 = dma.done.wait (!%p1448_p5), %s1156_s11, 128  }
 0x667   : > { %1736 = vsyncadd (!%p1448_p5), %s1156_s11, 4294967168  ;;  %s28_s10 = sadd.s32 1, %s1759_s10   ;;  %s2250_s18 = sld [smem:[#allocation24_spill]] }
 0x668   : > { %p25_p7 = scmp.ge.s32.totalorder %s28_s10, 4   ;;  %s2251_s30 = sld [smem:[#allocation21_spill]] }
 0x669   : > { %s2252_s9 = sld [smem:[#allocation23_spill]]  ;;  %s2253_s27 = smov %s1743_s28 }
 0x66a   : > { %s2254_s28 = smov %s1747_s29  ;;  %27 = sbr.rel (!%p25_p7) target bundleno = 12 (0xc), region = 118 }
 0x66d   : > { %s2255_s29 = smov %s2250_s18 }
 0x671   :  { %1161 = vsyncpa [#allocation7], 1 }
 0x672   :  { %1163 = vsyncpa [#allocation7 + $0x1], 1 }
 0x673   :  { %1164 = vsyncpa [#allocation10], 1 }
 0x674   :  { %1166 = vsyncpa [#allocation10 + $0x1], 1 }
 0x675   :  { %1167 = vsyncpa [#allocation13], 1 }
 0x676   :  { %1168 = vsyncpa [#allocation8], 1 }
 0x677   :  { %1170 = vsyncpa [#allocation8 + $0x1], 1 }

</bundles_post_ra>
